<compile_context>
chip_gen: v7x
topology: tpu7x:2x2x1
jax: 0.10.0
libtpu: 0.0.40
codegen_flags: <defaults>
</compile_context>

<pallas_src>
import functools

import jax
import jax.numpy as jnp
from jax.experimental import pallas as pl
from jax.experimental.pallas import tpu as pltpu


def _round_up(v, m):
    return (v + m - 1) // m * m


def _sublane_quantum(dtype):
    # Sub-32-bit dtypes pack along sublanes: 8 rows for 4-byte, 16 for 2-byte,
    # 32 for 1-byte elements.
    return {4: 8, 2: 16, 1: 32}.get(jnp.dtype(dtype).itemsize, 8)


def _vmem_capacity_bytes():
    # Physical VMEM of the local chip; conservative (v7x-class) fallback.
    try:
        info = pltpu.get_tpu_info()
        return int(getattr(info, "vmem_capacity_bytes", 64 << 20))
    except Exception:
        return 64 << 20


def _tv_kernel(x_ref, wmask_ref, out_ref, *, w, inv_ch, inv_cw, has_h, has_w):
    """One (tn, tl) tile of the flattened (B*C, H*W) input.

    x_ref     : (tn, tl) tile; tl is the full plane H*W or a whole number of
                image rows (tl % w == 0), so W-diffs never cross a tile
                boundary and H-diffs only miss the per-tile seam row (added
                back in the wrapper).
    wmask_ref : (1, tl-1) f32, 0 at the last column of every image row.
    out_ref   : (1, 1) SMEM slot owned by this grid step:
                h_tv_partial / count_h + w_tv_partial / count_w.
    """
    x = x_ref[...].astype(jnp.float32)   # widen BEFORE the diff (fp32 parity)

    if has_h:
        # In the flattened layout every +w difference stays inside the plane,
        # so no mask is needed for the H direction.
        dh = x[:, w:] - x[:, :-w]
        h_part = jnp.sum(dh * dh)
    else:
        h_part = jnp.float32(0.0)

    if has_w:
        dw = x[:, 1:] - x[:, :-1]
        # Reduce over the row (sublane) axis first, then mask once on a single
        # (1, tl-1) strip -> no tile-sized mask broadcast/multiply.
        col_sq = jnp.sum(dw * dw, axis=0, keepdims=True)
        w_part = jnp.sum(col_sq * wmask_ref[...])
    else:
        w_part = jnp.float32(0.0)

    # Normalisation folded in at scalar cost; inv_* may be inf for degenerate
    # H==1 / W==1 shapes, reproducing PyTorch's 0/0 -> nan behaviour.
    out_ref[0, 0] = h_part * inv_ch + w_part * inv_cw


def tv_loss(x, tv_loss_weight=1.0):
    """Pallas TPU implementation of TVLoss.forward for NCHW input x."""
    b, c, h, w = x.shape
    n = b * c
    L = h * w

    if L == 1:
        # Degenerate 1x1 plane: PyTorch yields 0/0 + 0/0 -> nan.
        return jnp.float32(float("nan"))

    itemsize = jnp.dtype(x.dtype).itemsize
    q = _sublane_quantum(x.dtype)
    n_pad = _round_up(n, q)
    total_f32 = n_pad * L * 4

    vmem_phys = _vmem_capacity_bytes()
    small_vmem = vmem_phys <= (64 << 20)           # v7x-class: 2 TCs, 64 MiB VMEM
    block_f32_target = (4 << 20) if small_vmem else (8 << 20)
    target_elems = max(q * 128, block_f32_target // 4)

    # ---- lane-axis tiling: th whole image rows per tile ----------------------
    # Needed so (a) q-row blocks of huge planes fit the VMEM budget and
    # (b) small-B*C inputs still expose >= 2 grid steps on 2-TC chips.
    def _pick_th():
        cands = [t for t in range(2, h) if h % t == 0 and (t * w) % 128 == 0]
        if not cands:
            return h
        fits = [t for t in cands if q * t * w <= target_elems]
        if q * L > target_elems:                   # must split for VMEM
            return max(fits) if fits else min(cands)
        if small_vmem and n_pad // q < 2 and total_f32 >= (2 << 20):
            pool = fits or cands                   # split for 2-TC parallelism
            pref = ([t for t in pool if h // t >= 4]
                    or [t for t in pool if h // t >= 2])
            if pref:
                return max(pref)
        return h

    th = _pick_th()
    tl = th * w
    grid_lanes = h // th

    # ---- row-axis tiling ------------------------------------------------------
    tn = max(q, (target_elems // tl) // q * q)
    tn = min(tn, n_pad)
    while n_pad % tn:
        tn -= q
    grid_rows = n_pad // tn
    if (small_vmem and grid_rows * grid_lanes < 2 and total_f32 >= (2 << 20)
            and n_pad // q >= 2):
        # Expose >= 2 (ideally >= 4) steps so both TensorCores get work.
        divs = [t for t in range(q, n_pad, q) if n_pad % t == 0]
        pref = [t for t in divs if n_pad // t >= 4] or divs
        if pref:
            tn = max(pref)
            grid_rows = n_pad // tn

    num_steps = grid_rows * grid_lanes

    # ---- flattened, lane-dense view (no lane padding; rows padded only if
    #      B*C is not a multiple of the sublane quantum) ------------------------
    x2d = x.reshape(n, L)
    if n_pad != n:
        x2d = jnp.pad(x2d, ((0, n_pad - n), (0, 0)))   # zero rows -> zero diffs

    # 0/1 mask over within-tile W-diff positions (last image column invalid);
    # identical for every tile because tl % w == 0.
    lane = jnp.arange(tl - 1, dtype=jnp.int32)
    wmask = (lane % w != (w - 1)).astype(jnp.float32).reshape(1, tl - 1)

    cnt_h = c * (h - 1) * w                 # tensor_size(x[:, :, 1:, :])
    cnt_w = c * h * (w - 1)                 # tensor_size(x[:, :, :, 1:])
    inv_ch = (1.0 / cnt_h) if cnt_h > 0 else float("inf")
    inv_cw = (1.0 / cnt_w) if cnt_w > 0 else float("inf")

    # VMEM accounting: double-buffered input + in-kernel f32 temps + mask.
    block_f32 = tn * tl * 4
    block_in = tn * tl * itemsize
    vmem_needed = 2 * block_in + 8 * block_f32 + 4 * tl * 4 + (256 << 10)
    vmem_limit = int(min(max(16 << 20, vmem_needed), vmem_phys - (12 << 20)))
    # TODO(synk): planes so large that even a q-row x minimal-lane-tile block
    # exceeds the per-generation budget (no valid th) may still spill; would
    # need element-level lane tiling with seam handling.

    grid_spec = pltpu.PrefetchScalarGridSpec(
        num_scalar_prefetch=0,
        grid=(grid_rows, grid_lanes),
        in_specs=[
            pl.BlockSpec((tn, tl), lambda i, j: (i, j)),
            # Constant mask: same block index every step -> fetched once.
            pl.BlockSpec((1, tl - 1), lambda i, j: (0, 0)),
        ],
        out_specs=pl.BlockSpec((1, 1), lambda i, j: (i * grid_lanes + j, 0),
                               memory_space=pltpu.MemorySpace.SMEM),
    )

    partials = pl.pallas_call(
        functools.partial(_tv_kernel, w=w, inv_ch=inv_ch, inv_cw=inv_cw,
                          has_h=h > 1, has_w=w > 1),
        out_shape=jax.ShapeDtypeStruct((num_steps, 1), jnp.float32),
        grid_spec=grid_spec,
        compiler_params=pltpu.CompilerParams(
            # No carried state across steps: both axes can shard across the
            # TensorCores on 2-TC chips; default double-buffering is kept.
            dimension_semantics=("parallel", "parallel"),
            vmem_limit_bytes=vmem_limit,
        ),
    )(x2d, wmask)

    total = jnp.sum(partials)

    # H-diffs that straddle a lane-tile seam (one image row per seam) -- thin
    # strided slices handled in plain JAX, negligible extra HBM traffic.
    if grid_lanes > 1:
        x3 = x.reshape(n, h, w)
        top = x3[:, th - 1:h - 1:th, :].astype(jnp.float32)
        bot = x3[:, th:h:th, :].astype(jnp.float32)
        total = total + jnp.sum((bot - top) ** 2) * inv_ch

    return tv_loss_weight * 2.0 * total / b


if __name__ == "__main__":
    key = jax.random.PRNGKey(0)
    x = jax.random.normal(key, (2, 4, 16, 16), dtype=jnp.float32)

    out = tv_loss(x, tv_loss_weight=1.0)
    out = jax.block_until_ready(out)

    # Plain-JAX reference (same math as the PyTorch module).
    b, c, h, w = x.shape
    h_tv_ref = jnp.sum((x[:, :, 1:, :] - x[:, :, :-1, :]) ** 2)
    w_tv_ref = jnp.sum((x[:, :, :, 1:] - x[:, :, :, :-1]) ** 2)
    ref = 2.0 * (h_tv_ref / (c * (h - 1) * w) + w_tv_ref / (c * h * (w - 1))) / b
    assert jnp.allclose(out, ref, rtol=1e-5, atol=1e-5), (out, ref)

    print("KERNEL_OK")
</pallas_src>

<mosaic_0001>
module attributes {stable_mosaic.version = 11 : i64} {
  func.func @_tv_kernel(%arg0: i32, %arg1: i32, %arg2: memref<8x256xf32, #tpu.memory_space<vmem>>, %arg3: memref<1x255xf32, #tpu.memory_space<vmem>>, %arg4: memref<1x1xf32, #tpu.memory_space<smem>>) attributes {dimension_semantics = [#tpu.dimension_semantics<parallel>, #tpu.dimension_semantics<parallel>], iteration_bounds = array<i64: 1, 1>, scalar_prefetch = 0 : i64, scratch_operands = 0 : i64, tpu.core_type = #tpu.core_type<tc>, window_params = [{transform_indices = @transform_0, window_bounds = array<i64: 8, 256>}, {pipeline_mode = #tpu.pipeline_mode<synchronous>, transform_indices = @transform_1, window_bounds = array<i64: 1, 255>}, {transform_indices = @transform_2, window_bounds = array<i64: 1, 1>}]} {
    %c0 = arith.constant 0 : index
    %c0_0 = arith.constant 0 : index
    %0 = vector.load %arg2[%c0, %c0_0] : memref<8x256xf32, #tpu.memory_space<vmem>>, vector<8x256xf32>
    %1 = vector.extract_strided_slice %0 {offsets = [0, 16], sizes = [8, 240], strides = [1, 1]} : vector<8x256xf32> to vector<8x240xf32>
    %2 = vector.extract_strided_slice %0 {offsets = [0, 0], sizes = [8, 240], strides = [1, 1]} : vector<8x256xf32> to vector<8x240xf32>
    %3 = arith.subf %1, %2 : vector<8x240xf32>
    %4 = arith.mulf %3, %3 : vector<8x240xf32>
    %5 = vector.shape_cast %4 : vector<8x240xf32> to vector<1x8x240xf32>
    %cst = arith.constant dense<0.000000e+00> : vector<1xf32>
    %6 = vector.multi_reduction <add>, %5, %cst [1, 2] : vector<1x8x240xf32> to vector<1xf32>
    %7 = vector.shape_cast %6 : vector<1xf32> to vector<1x1x1xf32>
    %8 = vector.extract %7[0, 0, 0] : f32 from vector<1x1x1xf32>
    %9 = vector.extract_strided_slice %0 {offsets = [0, 1], sizes = [8, 255], strides = [1, 1]} : vector<8x256xf32> to vector<8x255xf32>
    %10 = vector.extract_strided_slice %0 {offsets = [0, 0], sizes = [8, 255], strides = [1, 1]} : vector<8x256xf32> to vector<8x255xf32>
    %11 = arith.subf %9, %10 : vector<8x255xf32>
    %12 = arith.mulf %11, %11 : vector<8x255xf32>
    %cst_1 = arith.constant dense<0.000000e+00> : vector<255xf32>
    %13 = vector.multi_reduction <add>, %12, %cst_1 [0] : vector<8x255xf32> to vector<255xf32>
    %14 = vector.shape_cast %13 : vector<255xf32> to vector<1x255xf32>
    %c0_2 = arith.constant 0 : index
    %c0_3 = arith.constant 0 : index
    %15 = vector.load %arg3[%c0_2, %c0_3] : memref<1x255xf32, #tpu.memory_space<vmem>>, vector<1x255xf32>
    %16 = arith.mulf %14, %15 : vector<1x255xf32>
    %17 = vector.shape_cast %16 : vector<1x255xf32> to vector<1x1x255xf32>
    %cst_4 = arith.constant dense<0.000000e+00> : vector<1xf32>
    %18 = vector.multi_reduction <add>, %17, %cst_4 [1, 2] : vector<1x1x255xf32> to vector<1xf32>
    %19 = vector.shape_cast %18 : vector<1xf32> to vector<1x1x1xf32>
    %20 = vector.extract %19[0, 0, 0] : f32 from vector<1x1x1xf32>
    %cst_5 = arith.constant 0.00104166672 : f32
    %21 = arith.mulf %8, %cst_5 : f32
    %cst_6 = arith.constant 0.00104166672 : f32
    %22 = arith.mulf %20, %cst_6 : f32
    %23 = arith.addf %21, %22 : f32
    %c0_7 = arith.constant 0 : index
    %c0_8 = arith.constant 0 : index
    %24 = memref.load %arg4[%c0_7, %c0_8] : memref<1x1xf32, #tpu.memory_space<smem>>
    memref.store %23, %arg4[%c0_7, %c0_8] : memref<1x1xf32, #tpu.memory_space<smem>>
    return
  }
  func.func @transform_0(%arg0: i32, %arg1: i32) -> (i32, i32) {
    %c0_i32 = arith.constant 0 : i32
    return %arg0, %arg1 : i32, i32
  }
  func.func @transform_1(%arg0: i32, %arg1: i32) -> (i32, i32) {
    %c0_i32 = arith.constant 0 : i32
    %c0_i32_0 = arith.constant 0 : i32
    %c0_i32_1 = arith.constant 0 : i32
    return %c0_i32, %c0_i32_0 : i32, i32
  }
  func.func @transform_2(%arg0: i32, %arg1: i32) -> (i32, i32) {
    %c1_i32 = arith.constant 1 : i32
    %0 = arith.muli %arg0, %c1_i32 : i32
    %1 = arith.addi %0, %arg1 : i32
    %c0_i32 = arith.constant 0 : i32
    %c0_i32_0 = arith.constant 0 : i32
    return %1, %c0_i32 : i32, i32
  }
}

</mosaic_0001>

<bundles_post_ra>
// kernel: tpu_custom_call.1
= control target key start
LH: loop header
LB: loop body
LE: loop exit
PB: predicated region body
PF: predicated region fallthrough
CT: control target
= control target key end

     0   :  { %7 = vsyncpa [#allocation3], 0  ;;  %s249_s0 = inlined_call_operand.hbm [shape: f32[8,256], index: 0, kind: input, shape index: {}]   ;;  %s250_s1 = inlined_call_operand.vmem [shape: f32[1,255], index: 1, kind: input, shape index: {}]   ;;  %s251_s2 = inlined_call_operand.hbm [shape: f32[1,1], index: 2, kind: output, shape index: {}]  }
   0x1   :  { %8 = vsyncpa [#allocation4], 0  ;;  %s199_s9 = smov [#allocation2]   ;;  %s163_s13 = scalar_lea.hbm %s249_s0, 256 }
   0x2   :  { %s15_s10 = sshll.u32 %s199_s9, 4  ;;  %p164_p0 = scmp.ne.s32.totalorder %s249_s0, %s163_s13  ;;  %s16_s10 = int_to_ptr.vmem [resolvable:$true] %s15_s10 }
   0x3   :  { %p167_p1 = scmp.lt.u32.totalorder %s163_s13, %s249_s0 }
   0x5   :  { %p169_p2 = pnand %p167_p1, %p164_p0 }
   0x7   :  { %172 = shalt.err (!%p169_p2)
}
   0x8   :  { %s173_s18 = scalar_lea.vmem %s16_s10, 256  ;;  %p178_p4 = scmp.lt.s32.totalorder %s16_s10, %s16_s10 }
   0x9   :  { %p174_p3 = scmp.ne.s32.totalorder %s16_s10, %s173_s18  ;;  %p179_p5 = scmp.lt.s32.totalorder %s173_s18, %s173_s18 }
   0xb   :  { %p180_p6 = por %p179_p5, %p178_p4 }
   0xd   :  { %p181_p7 = pnand %p180_p6, %p174_p3 }
   0xf   :  { %184 = shalt.err (!%p181_p7)
}
  0x10   :  { %18 = dma.hbm_to_vmem [thread:$0]  %s249_s0, 256, %s16_s10, [#allocation3]  }
  0x11   :  { %195 = dma.done.wait [#allocation3], 256  }
  0x12   :  { %196 = vsyncadd [#allocation3], 4294967040  ;;  %v90_v0 = vlaneseq  ;;  %v25_v2 = vld [vmem:[#allocation2] sm:$0xff]  ;;  %s200_s21 = smov 1   ;;  %s201_s22 = smov 16   ;;  %v26_v5 = vld [vmem:[#allocation2 + $0x8] sm:$0xff] }
  0x13   :  { %62 = vrot.lane.b32.xlu0 %v25_v2, %s200_s21  ;;  %29 = vrot.lane.b32.xlu1 %v25_v2, %s201_s22  ;;  %v88_v6 = vld [vmem:[%s250_s1] sm:$0x3]  ;;  %vm74_vm0 = vcmask 1047560   ;;  %vm66_vm1 = vcmask 7168   ;;  %vm33_vm2 = vcmask 130048   ;;  %s202_s0 = smov 127  }
  0x14   :  { %v91_v1 = vshrl.u32 %v90_v0, 7  ;;  %s203_s1 = smov 112   ;;  %vm113_vm3 = vcmask 1039360   ;;  %vm119_vm4 = vcmask 1032192   ;;  %vm117_vm5 = vcmask 1040384   ;;  %s185_s4 = scalar_lea.hbm %s251_s2, 16 }
  0x15   :  { %vm47_vm6 = vcmask 916480   ;;  %p186_p8 = scmp.ne.s32.totalorder %s251_s2, %s185_s4  ;;  %p189_p9 = scmp.lt.u32.totalorder %s185_s4, %s251_s2 }
  0x16   :  { %v92_v3 = vsub.s32 0, %v91_v1  ;;  %v96_v4 = vsub.s32 1, %v91_v1 }
  0x17   :  { %64 = vrot.lane.b32.xlu0 %v26_v5, %s200_s21  ;;  %31 = vrot.lane.b32.xlu1 %v26_v5, %s201_s22  ;;  %p191_p10 = pnand %p189_p9, %p186_p8 }
  0x18   :  { %v93_v7 = vrot.slane %v88_v6, %v92_v3  ;;  %v97_v8 = vrot.slane %v88_v6, %v96_v4 }
  0x1b   :  { %98 = vrot.lane.b32.xlu0 %v93_v7, %s200_s21  ;;  %100 = vrot.lane.b32.xlu1 %v97_v8, %s200_s21 }
  0x85   :  { %v63_v9 = vpop.permute.xlu0 %62  ;;  %v30_v17 = vpop.permute.xlu1 %29 }
  0x86   :  { %v70_v10 = vsub.f32 %v25_v2, %v63_v9  ;;  %v37_v31 = vsub.f32 %v25_v2, %v30_v17 }
  0x88   :  { %v72_v11 = vmul.f32 %v70_v10, %v70_v10  ;;  %v39_v37 = vmul.f32 %v37_v31, %v37_v31 }
  0x89   :  { %v65_v12 = vpop.permute.xlu0 %64  ;;  %v32_v23 = vpop.permute.xlu1 %31 }
  0x8a   :  { %v75_v13 = vsel %vm74_vm0, %v72_v11, 0.0  ;;  %v67_v14 = vsel %vm66_vm1, %v63_v9, %v65_v12  ;;  %v34_v34 = vsel %vm33_vm2, %v30_v17, %v32_v23 }
  0x8b   :  { %v76_v15 = vrot.slane %v75_v13, 4  ;;  %v71_v16 = vsub.f32 %v26_v5, %v67_v14  ;;  %v38_v38 = vsub.f32 %v26_v5, %v34_v34 }
  0x8d   :  { %v77_v18 = vadd.f32 %v76_v15, %v75_v13  ;;  %v73_v19 = vmul.f32 %v71_v16, %v71_v16  ;;  %v99_v27 = vpop.permute.xlu0 %98  ;;  %v101_v29 = vpop.permute.xlu1 %100  ;;  %v40_v40 = vmul.f32 %v38_v38, %v38_v38 }
  0x8e   :  { %v102_v35 = vsel %vm66_vm1, %v99_v27, %v101_v29 }
  0x8f   :  { %v78_v20 = vrot.slane %v77_v18, 2  ;;  %v82_v21 = vrot.slane %v73_v19, 4 }
  0x91   :  { %v83_v22 = vadd.f32 %v82_v21, %v73_v19  ;;  %v79_v24 = vadd.f32 %v78_v20, %v77_v18 }
  0x93   :  { %v84_v25 = vrot.slane %v83_v22, 2  ;;  %v80_v26 = vrot.slane %v79_v24, 1 }
  0x95   :  { %v81_v28 = vadd.f32 %v80_v26, %v79_v24  ;;  %v85_v30 = vadd.f32 %v84_v25, %v83_v22 }
  0x97   :  { %v105_v32 = vmul.f32 %v99_v27, %v81_v28  ;;  %v86_v33 = vrot.slane %v85_v30, 1 }
  0x99   :  { %v87_v36 = vadd.f32 %v86_v33, %v85_v30  ;;  %109 = vrot.lane.b32.xlu0 %v105_v32, %s202_s0 }
  0x9b   :  { %v106_v39 = vmul.f32 %v102_v35, %v87_v36 }
  0x9d   :  { %43 = vrot.lane.b32.xlu0 %v39_v37, %s203_s1  ;;  %111 = vrot.lane.b32.xlu1 %v106_v39, %s202_s0 }
  0xa1   :  { %45 = vrot.lane.b32.xlu1 %v40_v40, %s203_s1 }
 0x10b   :  { %v110_v41 = vpop.permute.xlu0 %109 }
 0x10f   :  { %v112_v42 = vpop.permute.xlu1 %111  ;;  %v44_v47 = vpop.permute.xlu0 %43 }
 0x110   :  { %v114_v43 = vsel %vm113_vm3, %v110_v41, %v112_v42  ;;  %v120_v44 = vsel %vm119_vm4, %v112_v42, 0.0 }
 0x111   :  { %v118_v45 = vsel %vm117_vm5, %v114_v43, 0.0 }
 0x112   :  { %v121_v46 = vadd.f32 %v120_v44, %v118_v45 }
 0x113   :  { %v46_v48 = vpop.permute.xlu1 %45 }
 0x114   :  { %v48_v49 = vsel %vm47_vm6, %v44_v47, %v46_v48  ;;  %v51_v50 = vsel %vm47_vm6, %v46_v48, 0.0  ;;  %122 = vadd.xlane.f32.xlu1 %v121_v46 }
 0x115   :  { %v52_v51 = vadd.f32 %v51_v50, %v48_v49 }
 0x117   :  { %53 = vadd.xlane.f32.xlu0 %v52_v51 }
 0x1a1   :  { %v123_v52 = vpop.xlane.xlu1 %122 }
 0x1a2   :  { %v124_v53 = vrot.slane %v123_v52, 4 }
 0x1a4   :  { %v125_v54 = vadd.f32 %v124_v53, %v123_v52  ;;  %v54_v55 = vpop.xlane.xlu0 %53 }
 0x1a5   :  { %v55_v56 = vrot.slane %v54_v55, 4 }
 0x1a6   :  { %v126_v57 = vrot.slane %v125_v54, 2 }
 0x1a7   :  { %v56_v58 = vadd.f32 %v55_v56, %v54_v55 }
 0x1a8   :  { %v127_v59 = vadd.f32 %v126_v57, %v125_v54 }
 0x1a9   :  { %v57_v60 = vrot.slane %v56_v58, 2 }
 0x1aa   :  { %v128_v62 = vrot.slane %v127_v59, 1 }
 0x1ab   :  { %v58_v61 = vadd.f32 %v57_v60, %v56_v58 }
 0x1ac   :  { %v129_v1 = vadd.f32 %v128_v62, %v127_v59 }
 0x1ad   :  { %v59_v63 = vrot.slane %v58_v61, 1 }
 0x1af   :  { %v60_v0 = vadd.f32 %v59_v63, %v58_v61 }
 0x1b1   :  { %153 = vpush %v60_v0 }
 0x1b2   :  { %155 = vpush %v129_v1 }
 0x1e2   :  { %s154_s25 = spop %153 }
 0x1e3   :  { %s131_s26 = smul.f32 0.0010416667, %s154_s25  ;;  %s156_s27 = spop %155 }
 0x1e4   :  { %s132_s28 = smul.f32 0.0010416667, %s156_s27 }
 0x1e6   :  { %s133_s29 = sadd.f32 %s132_s28, %s131_s26 }
 0x1e8   :  { %135 = sst [smem:[#allocation5]] %s133_s29 }
 0x1e9   :  { %194 = shalt.err (!%p191_p10)
}
 0x1ea   :  { %s204_s9 = smov [#allocation5]  }
 0x1eb   :  { %146 = dma.smem_to_hbm %s204_s9, 16, %s251_s2, [#allocation4]  }
 0x1ec   :  { %197 = dma.done.wait [#allocation4], 16  }
 0x1ed   :  { %198 = vsyncadd [#allocation4], 4294967280 }
 0x1ee   :  { %150 = sfence }
 0x1ef   :  { %151 = vsyncpa [#allocation3], 1 }
 0x1f0   :  { %152 = vsyncpa [#allocation4], 1 }

</bundles_post_ra>
